<compile_context>
chip_gen: v7x
topology: tpu7x:2x2x1
jax: 0.10.0
libtpu: 0.0.40
codegen_flags: <defaults>
</compile_context>

<pallas_src>
import functools
import math

import jax
import jax.numpy as jnp
from jax.experimental import pallas as pl
from jax.experimental.pallas import tpu as pltpu

F32 = jnp.float32
BF16 = jnp.bfloat16
NEG_INF = -10000.0          # BERT-style additive attention mask value
LN_EPS = 1e-12              # BertLayerNorm eps

ROW_CAP = 256               # row-tile cap (safe on v7x's 64 MiB VMEM / 32 MiB scoped)
K_CAP = 512                 # contraction-axis tile cap
SK_CAP = 512                # attention key/value sequence tile cap

_SEM_1D = pltpu.CompilerParams(dimension_semantics=("parallel",))
_SEM_2D = pltpu.CompilerParams(dimension_semantics=("parallel", "arbitrary"))


def _tile(dim, cap):
    """Largest multiple-of-8 divisor of `dim` <= cap; `dim` itself when dim <= cap."""
    if dim <= cap:
        return dim
    for t in range(cap - cap % 8, 7, -8):
        if dim % t == 0:
            return t
    # TODO(synk): pad + mask a ragged tail (pl.cdiv grid) instead of one full-dim block.
    return dim


def _gelu(x):
    # TODO(synk): PyTorch BERT's default 'gelu' is erf-based; tanh approximation here.
    return 0.5 * x * (1.0 + jnp.tanh(0.7978845608028654 * (x + 0.044715 * x * x * x)))


# ----------------------------- Pallas kernels ------------------------------ #

def _linear_kernel(x_ref, w_ref, b_ref, o_ref, acc_ref):
    """y = x @ w + b with a K grid axis and f32 VMEM accumulator."""
    k = pl.program_id(1)

    @pl.when(k == 0)
    def _():
        acc_ref[...] = jnp.zeros_like(acc_ref)

    acc_ref[...] += jnp.dot(x_ref[...].astype(BF16), w_ref[...],
                            preferred_element_type=jnp.float32)

    @pl.when(k == pl.num_programs(1) - 1)
    def _():
        o_ref[...] = (acc_ref[...] + b_ref[...]).astype(o_ref.dtype)


def pallas_linear(x, w, b, out_dtype=BF16):
    M, K = x.shape
    N = w.shape[1]
    TM = _tile(M, ROW_CAP)
    TK = _tile(K, K_CAP)
    return pl.pallas_call(
        _linear_kernel,
        out_shape=jax.ShapeDtypeStruct((M, N), out_dtype),
        grid=(M // TM, K // TK),
        in_specs=[
            pl.BlockSpec((TM, TK), lambda i, k: (i, k)),
            pl.BlockSpec((TK, N), lambda i, k: (k, 0)),
            pl.BlockSpec((1, N), lambda i, k: (0, 0)),
        ],
        out_specs=pl.BlockSpec((TM, N), lambda i, k: (i, 0)),
        scratch_shapes=[pltpu.VMEM((TM, N), jnp.float32)],
        compiler_params=_SEM_2D,
    )(x, w, b.reshape(1, N))


def _linear_add_ln_kernel(x_ref, w_ref, b_ref, r_ref, g_ref, bb_ref, o_ref,
                          acc_ref, *, eps):
    """LayerNorm(x @ w + b + residual) * gamma + beta, K-tiled with f32 accumulator."""
    k = pl.program_id(1)

    @pl.when(k == 0)
    def _():
        acc_ref[...] = jnp.zeros_like(acc_ref)

    acc_ref[...] += jnp.dot(x_ref[...].astype(BF16), w_ref[...],
                            preferred_element_type=jnp.float32)

    @pl.when(k == pl.num_programs(1) - 1)
    def _():
        y = acc_ref[...] + b_ref[...] + r_ref[...].astype(jnp.float32)
        mean = jnp.mean(y, axis=-1, keepdims=True)
        var = jnp.mean((y - mean) * (y - mean), axis=-1, keepdims=True)
        y = (y - mean) * jax.lax.rsqrt(var + eps)
        o_ref[...] = (y * g_ref[...] + bb_ref[...]).astype(o_ref.dtype)


def pallas_linear_add_ln(x, w, b, residual, gamma, beta, eps=LN_EPS, out_dtype=BF16):
    M, K = x.shape
    N = w.shape[1]
    TM = _tile(M, ROW_CAP)
    TK = _tile(K, K_CAP)
    return pl.pallas_call(
        functools.partial(_linear_add_ln_kernel, eps=eps),
        out_shape=jax.ShapeDtypeStruct((M, N), out_dtype),
        grid=(M // TM, K // TK),
        in_specs=[
            pl.BlockSpec((TM, TK), lambda i, k: (i, k)),
            pl.BlockSpec((TK, N), lambda i, k: (k, 0)),
            pl.BlockSpec((1, N), lambda i, k: (0, 0)),
            pl.BlockSpec((TM, N), lambda i, k: (i, 0)),
            pl.BlockSpec((1, N), lambda i, k: (0, 0)),
            pl.BlockSpec((1, N), lambda i, k: (0, 0)),
        ],
        out_specs=pl.BlockSpec((TM, N), lambda i, k: (i, 0)),
        scratch_shapes=[pltpu.VMEM((TM, N), jnp.float32)],
        compiler_params=_SEM_2D,
    )(x, w, b.reshape(1, N), residual, gamma.reshape(1, N), beta.reshape(1, N))


def _fused_proj_kernel(x_ref, w_ref, b_ref, *o_refs, hidden):
    """One matmul against a concatenated weight; split into lane-dense bf16 outputs."""
    y = jnp.dot(x_ref[...].astype(BF16), w_ref[...],
                preferred_element_type=jnp.float32)
    y = y + b_ref[...]
    for idx, o_ref in enumerate(o_refs):
        o_ref[...] = y[:, idx * hidden:(idx + 1) * hidden].astype(o_ref.dtype)


def pallas_fused_proj(x, w, b, hidden, n_out):
    """Fused QKV / KV projection: x @ (K, n_out*hidden) -> n_out (M, hidden) bf16 outputs."""
    # TODO(synk): add N/K grid tiling for hidden sizes well beyond BERT-base.
    M, K = x.shape
    N = w.shape[1]
    assert N == n_out * hidden
    TM = _tile(M, ROW_CAP)
    out_sh = jax.ShapeDtypeStruct((M, hidden), BF16)
    return pl.pallas_call(
        functools.partial(_fused_proj_kernel, hidden=hidden),
        out_shape=tuple(out_sh for _ in range(n_out)),
        grid=(M // TM,),
        in_specs=[
            pl.BlockSpec((TM, K), lambda i: (i, 0)),
            pl.BlockSpec((K, N), lambda i: (0, 0)),
            pl.BlockSpec((1, N), lambda i: (0, 0)),
        ],
        out_specs=tuple(pl.BlockSpec((TM, hidden), lambda i: (i, 0))
                        for _ in range(n_out)),
        compiler_params=_SEM_1D,
    )(x, w, b.reshape(1, N))


def _ffn_kernel(x_ref, wi_ref, bi_ref, wo_ref, bo_ref, g_ref, bb_ref, o_ref,
                acc_ref, *, eps):
    """Fused FFN: gelu(x@w_i+b_i) chunk -> accumulate chunk@w_o, residual+LN epilogue.

    The (M, intermediate) GELU activation never touches HBM."""
    j = pl.program_id(1)

    @pl.when(j == 0)
    def _():
        acc_ref[...] = jnp.zeros_like(acc_ref)

    h = jnp.dot(x_ref[...].astype(BF16), wi_ref[...],
                preferred_element_type=jnp.float32)
    h = _gelu(h + bi_ref[...])
    acc_ref[...] += jnp.dot(h.astype(BF16), wo_ref[...],
                            preferred_element_type=jnp.float32)

    @pl.when(j == pl.num_programs(1) - 1)
    def _():
        y = acc_ref[...] + bo_ref[...] + x_ref[...].astype(jnp.float32)
        mean = jnp.mean(y, axis=-1, keepdims=True)
        var = jnp.mean((y - mean) * (y - mean), axis=-1, keepdims=True)
        y = (y - mean) * jax.lax.rsqrt(var + eps)
        o_ref[...] = (y * g_ref[...] + bb_ref[...]).astype(o_ref.dtype)


def pallas_ffn(x, w_i, b_i, w_o, b_o, gamma, beta, eps=LN_EPS, out_dtype=BF16):
    M, H = x.shape
    I = w_i.shape[1]
    TM = _tile(M, ROW_CAP)
    TI = _tile(I, K_CAP)
    return pl.pallas_call(
        functools.partial(_ffn_kernel, eps=eps),
        out_shape=jax.ShapeDtypeStruct((M, H), out_dtype),
        grid=(M // TM, I // TI),
        in_specs=[
            pl.BlockSpec((TM, H), lambda i, j: (i, 0)),   # x (also the residual)
            pl.BlockSpec((H, TI), lambda i, j: (0, j)),   # w_i chunk
            pl.BlockSpec((1, TI), lambda i, j: (0, j)),   # b_i chunk
            pl.BlockSpec((TI, H), lambda i, j: (j, 0)),   # w_o chunk
            pl.BlockSpec((1, H), lambda i, j: (0, 0)),    # b_o
            pl.BlockSpec((1, H), lambda i, j: (0, 0)),    # gamma
            pl.BlockSpec((1, H), lambda i, j: (0, 0)),    # beta
        ],
        out_specs=pl.BlockSpec((TM, H), lambda i, j: (i, 0)),
        scratch_shapes=[pltpu.VMEM((TM, H), jnp.float32)],
        compiler_params=_SEM_2D,
    )(x, w_i, b_i.reshape(1, I), w_o, b_o.reshape(1, H),
      gamma.reshape(1, H), beta.reshape(1, H))


def _ln_kernel(x_ref, g_ref, b_ref, o_ref, *, eps):
    """Plain LayerNorm (no residual) over the last axis, f32 statistics."""
    x = x_ref[...].astype(jnp.float32)
    mean = jnp.mean(x, axis=-1, keepdims=True)
    var = jnp.mean((x - mean) * (x - mean), axis=-1, keepdims=True)
    y = (x - mean) * jax.lax.rsqrt(var + eps)
    o_ref[...] = (y * g_ref[...] + b_ref[...]).astype(o_ref.dtype)


def pallas_layernorm(x, gamma, beta, eps=LN_EPS, out_dtype=BF16):
    M, H = x.shape
    TM = _tile(M, ROW_CAP)
    return pl.pallas_call(
        functools.partial(_ln_kernel, eps=eps),
        out_shape=jax.ShapeDtypeStruct((M, H), out_dtype),
        grid=(M // TM,),
        in_specs=[
            pl.BlockSpec((TM, H), lambda i: (i, 0)),
            pl.BlockSpec((1, H), lambda i: (0, 0)),
            pl.BlockSpec((1, H), lambda i: (0, 0)),
        ],
        out_specs=pl.BlockSpec((TM, H), lambda i: (i, 0)),
        compiler_params=_SEM_1D,
    )(x, gamma.reshape(1, H), beta.reshape(1, H))


def _attention_kernel(q_ref, k_ref, v_ref, m_ref, o_ref,
                      mx_ref, l_ref, acc_ref, *, num_heads, scale):
    """Flash-style attention: grid=(batch, Sk tiles), online softmax per head.

    All heads of one batch per step; K transposed once per step (not per head);
    each head's context written straight into its column range of the output."""
    j = pl.program_id(1)

    @pl.when(j == 0)
    def _():
        mx_ref[...] = jnp.full_like(mx_ref, -jnp.inf)
        l_ref[...] = jnp.zeros_like(l_ref)
        acc_ref[...] = jnp.zeros_like(acc_ref)

    q = q_ref[0]                                                  # (Sq, H)   bf16
    k = k_ref[0]                                                  # (TSk, H)  bf16
    v = v_ref[0]                                                  # (TSk, H)  bf16
    mask_add = (1.0 - m_ref[0].astype(jnp.float32)) * NEG_INF     # (1, TSk), VPU

    kT = k.astype(BF16).T                                         # one XLU transpose / step

    H = q.shape[-1]
    dh = H // num_heads
    for h in range(num_heads):                                    # static unroll over heads
        lo = h * dh
        qh = q[:, lo:lo + dh].astype(BF16)                        # (Sq, dh)
        s = jnp.dot(qh, kT[lo:lo + dh, :],
                    preferred_element_type=jnp.float32)           # (Sq, TSk)
        s = s * scale + mask_add
        m_prev = mx_ref[h]                                        # (Sq, 1)
        m_new = jnp.maximum(m_prev, jnp.max(s, axis=-1, keepdims=True))
        alpha = jnp.exp(m_prev - m_new)
        p = jnp.exp(s - m_new)
        l_ref[h] = alpha * l_ref[h] + jnp.sum(p, axis=-1, keepdims=True)
        acc_ref[:, lo:lo + dh] = (
            alpha * acc_ref[:, lo:lo + dh]
            + jnp.dot(p.astype(BF16), v[:, lo:lo + dh].astype(BF16),
                      preferred_element_type=jnp.float32))
        mx_ref[h] = m_new

    @pl.when(j == pl.num_programs(1) - 1)
    def _():
        for h in range(num_heads):
            lo = h * dh
            o_ref[0, :, lo:lo + dh] = (
                acc_ref[:, lo:lo + dh]
                * pl.reciprocal(l_ref[h], approx=True)).astype(o_ref.dtype)


def pallas_attention(q, k, v, mask_b1k, num_heads, scale):
    # TODO(synk): for very long Sq / head-major layouts, move heads onto the grid
    # and tile Sq as well (head-per-step avoids the sub-128-lane per-head slices).
    B, Sq, H = q.shape
    Sk = k.shape[1]
    TSk = _tile(Sk, SK_CAP)
    return pl.pallas_call(
        functools.partial(_attention_kernel, num_heads=num_heads, scale=scale),
        out_shape=jax.ShapeDtypeStruct((B, Sq, H), BF16),
        grid=(B, Sk // TSk),
        in_specs=[
            pl.BlockSpec((1, Sq, H), lambda b, j: (b, 0, 0)),
            pl.BlockSpec((1, TSk, H), lambda b, j: (b, j, 0)),
            pl.BlockSpec((1, TSk, H), lambda b, j: (b, j, 0)),
            pl.BlockSpec((1, 1, TSk), lambda b, j: (b, 0, j)),
        ],
        out_specs=pl.BlockSpec((1, Sq, H), lambda b, j: (b, 0, 0)),
        scratch_shapes=[
            pltpu.VMEM((num_heads, Sq, 1), jnp.float32),   # running max per head
            pltpu.VMEM((num_heads, Sq, 1), jnp.float32),   # running denom per head
            pltpu.VMEM((Sq, H), jnp.float32),              # context accumulator
        ],
        compiler_params=_SEM_2D,
    )(q, k, v, mask_b1k)


# ------------------------------ BERT pieces -------------------------------- #

def _w(key, din, dout, std=0.02):
    return (jax.random.normal(key, (din, dout), F32) * std).astype(BF16)


def init_bert_params(key, vocab_size, hidden, intermediate, num_layers,
                     max_position, type_vocab, cross_attention):
    std = 0.02
    keys = jax.random.split(key, 4 + num_layers)
    params = {
        "emb": {
            "word": jax.random.normal(keys[0], (vocab_size, hidden), F32) * std,
            "pos": jax.random.normal(keys[1], (max_position, hidden), F32) * std,
            "type": jax.random.normal(keys[2], (type_vocab, hidden), F32) * std,
            "ln_g": jnp.ones((hidden,), F32),
            "ln_b": jnp.zeros((hidden,), F32),
        },
        "pooler": {"w": _w(keys[3], hidden, hidden), "b": jnp.zeros((hidden,), F32)},
        "layers": [],
    }
    for l in range(num_layers):
        lk = jax.random.split(keys[4 + l], 8)
        layer = {
            "self": {
                "w_qkv": _w(lk[0], hidden, 3 * hidden),        # fused Q|K|V weight
                "b_qkv": jnp.zeros((3 * hidden,), F32),
                "w_o": _w(lk[1], hidden, hidden),
                "b_o": jnp.zeros((hidden,), F32),
                "ln_g": jnp.ones((hidden,), F32),
                "ln_b": jnp.zeros((hidden,), F32),
            },
        }
        if cross_attention:
            layer["cross"] = {
                "w_q": _w(lk[2], hidden, hidden),
                "b_q": jnp.zeros((hidden,), F32),
                "w_kv": _w(lk[3], hidden, 2 * hidden),         # fused K|V weight
                "b_kv": jnp.zeros((2 * hidden,), F32),
                "w_o": _w(lk[4], hidden, hidden),
                "b_o": jnp.zeros((hidden,), F32),
                "ln_g": jnp.ones((hidden,), F32),
                "ln_b": jnp.zeros((hidden,), F32),
            }
        layer["ffn"] = {
            "w_i": _w(lk[5], hidden, intermediate),
            "b_i": jnp.zeros((intermediate,), F32),
            "w_o": _w(lk[6], intermediate, hidden),
            "b_o": jnp.zeros((hidden,), F32),
            "ln_g": jnp.ones((hidden,), F32),
            "ln_b": jnp.zeros((hidden,), F32),
        }
        params["layers"].append(layer)
    return params


def bert_embeddings(p, input_ids, position_ids, token_type_ids):
    # Embedding table gathers have no clean Pallas win at these sizes; done in XLA.
    x = (p["word"][input_ids] + p["pos"][position_ids]
         + p["type"][token_type_ids]).astype(F32)
    B, S, H = x.shape
    y = pallas_layernorm(x.reshape(B * S, H), p["ln_g"], p["ln_b"])   # -> bf16
    return y.reshape(B, S, H)


def _mask_b1k(mask_2d):
    """(B, Sk) 1/0 visibility mask -> (B, 1, Sk) f32 (additive mask built in-kernel)."""
    B, Sk = mask_2d.shape
    return mask_2d.astype(F32).reshape(B, 1, Sk)


def self_attention_block(p, hidden, mask_b1k, num_heads):
    B, S, H = hidden.shape
    x = hidden.reshape(B * S, H)                                  # bf16 residual stream
    q, k, v = pallas_fused_proj(x, p["w_qkv"], p["b_qkv"], H, 3)  # bf16 activations
    ctx = pallas_attention(q.reshape(B, S, H), k.reshape(B, S, H),
                           v.reshape(B, S, H), mask_b1k, num_heads,
                           1.0 / math.sqrt(H // num_heads))
    out = pallas_linear_add_ln(ctx.reshape(B * S, H), p["w_o"], p["b_o"],
                               x, p["ln_g"], p["ln_b"])           # fused residual + LN
    return out.reshape(B, S, H)


def cross_attention_block(p, hidden, enc, mask_b1k, num_heads):
    B, Sq, H = hidden.shape
    Sk = enc.shape[1]
    x = hidden.reshape(B * Sq, H)
    xk = enc.reshape(B * Sk, H)
    q = pallas_linear(x, p["w_q"], p["b_q"])                      # bf16
    k, v = pallas_fused_proj(xk, p["w_kv"], p["b_kv"], H, 2)      # bf16
    ctx = pallas_attention(q.reshape(B, Sq, H), k.reshape(B, Sk, H),
                           v.reshape(B, Sk, H), mask_b1k, num_heads,
                           1.0 / math.sqrt(H // num_heads))
    out = pallas_linear_add_ln(ctx.reshape(B * Sq, H), p["w_o"], p["b_o"],
                               x, p["ln_g"], p["ln_b"])           # fused residual + LN
    return out.reshape(B, Sq, H)


def ffn_block(p, hidden):
    B, S, H = hidden.shape
    x = hidden.reshape(B * S, H)
    out = pallas_ffn(x, p["w_i"], p["b_i"], p["w_o"], p["b_o"],
                     p["ln_g"], p["ln_b"])                        # fully fused FFN
    return out.reshape(B, S, H)


def bert_encoder_forward(params, input_ids, attention_mask, num_heads):
    B, S = input_ids.shape
    position_ids = jnp.broadcast_to(jnp.arange(S, dtype=jnp.int32), (B, S))
    token_type_ids = jnp.zeros_like(input_ids)
    hidden = bert_embeddings(params["emb"], input_ids, position_ids, token_type_ids)
    self_mask = _mask_b1k(attention_mask)
    for layer in params["layers"]:
        hidden = self_attention_block(layer["self"], hidden, self_mask, num_heads)
        hidden = ffn_block(layer["ffn"], hidden)
    # preds_t[2][-1] in the PyTorch code == last element of hidden_states == this.
    return hidden


def bert_decoder_forward(params, input_ids, attention_mask, position_ids,
                         encoder_hidden_states, encoder_attention_mask, num_heads):
    token_type_ids = jnp.zeros_like(input_ids)
    hidden = bert_embeddings(params["emb"], input_ids, position_ids, token_type_ids)
    self_mask = _mask_b1k(attention_mask)
    # TODO(synk): some transformers versions add a causal mask to decoder
    # self-attention; the multi-label class tokens here are order-free, so we
    # keep self-attention bidirectional (attention_mask is all ones anyway).
    cross_mask = _mask_b1k(encoder_attention_mask)
    for layer in params["layers"]:
        hidden = self_attention_block(layer["self"], hidden, self_mask, num_heads)
        hidden = cross_attention_block(layer["cross"], hidden,
                                       encoder_hidden_states, cross_mask, num_heads)
        hidden = ffn_block(layer["ffn"], hidden)
    # Pooler: 2-row matmul — plain XLA is cheaper than a Pallas launch.
    pooled = jnp.tanh(
        jnp.dot(hidden[:, 0, :].astype(BF16), params["pooler"]["w"],
                preferred_element_type=jnp.float32) + params["pooler"]["b"])
    return hidden, pooled       # (sequence_output, pooled_output)


def mlabel_decoder_forward(params, inp_classes, encoder_input=None,
                           encoder_output=None, encoder_attention_mask=None):
    num_heads = params["num_heads"]
    if encoder_output is None:
        if encoder_attention_mask is None:
            encoder_attention_mask = jnp.ones_like(encoder_input)
        encoder_output = bert_encoder_forward(params["encoder"], encoder_input,
                                              encoder_attention_mask, num_heads)
    elif encoder_attention_mask is None:
        encoder_attention_mask = jnp.ones(encoder_output.shape[:2], jnp.int32)
    positions = jnp.ones_like(inp_classes)                       # position_ids = 1
    decoder_output = bert_decoder_forward(
        params["decoder"], inp_classes, jnp.ones_like(inp_classes), positions,
        encoder_output, encoder_attention_mask, num_heads)
    # NOTE: self.classifier is declared in __init__ but never used in forward().
    return encoder_output, encoder_attention_mask, decoder_output


# --------------------------------- main ------------------------------------ #

if __name__ == "__main__":
    HIDDEN, HEADS, INTER, LAYERS = 32, 2, 64, 2
    ENC_VOCAB, NUM_CLASSES = 64, 12
    MAX_POS, TYPE_VOCAB = 32, 2
    B, S_ENC, S_DEC = 2, 16, 8

    key = jax.random.PRNGKey(0)
    k_enc, k_dec, k_cls, k_in1, k_in2 = jax.random.split(key, 5)

    params = {
        "num_heads": HEADS,
        "encoder": init_bert_params(k_enc, ENC_VOCAB, HIDDEN, INTER, LAYERS,
                                    MAX_POS, TYPE_VOCAB, cross_attention=False),
        "decoder": init_bert_params(k_dec, NUM_CLASSES, HIDDEN, INTER, LAYERS,
                                    MAX_POS, TYPE_VOCAB, cross_attention=True),
        # classifier (hidden -> 1): present in the module but unused in forward()
        "classifier": {"w": _w(k_cls, HIDDEN, 1), "b": jnp.zeros((1,), F32)},
    }

    encoder_input = jax.random.randint(k_in1, (B, S_ENC), 0, ENC_VOCAB, dtype=jnp.int32)
    inp_classes = jax.random.randint(k_in2, (B, S_DEC), 0, NUM_CLASSES, dtype=jnp.int32)

    enc_out, enc_mask, (dec_seq, dec_pooled) = mlabel_decoder_forward(
        params, inp_classes, encoder_input)

    jax.block_until_ready((enc_out, enc_mask, dec_seq, dec_pooled))
    assert enc_out.shape == (B, S_ENC, HIDDEN)
    assert enc_mask.shape == (B, S_ENC)
    assert dec_seq.shape == (B, S_DEC, HIDDEN)
    assert dec_pooled.shape == (B, HIDDEN)
    print("KERNEL_OK")
</pallas_src>

<mosaic_0001>
module attributes {stable_mosaic.version = 11 : i64} {
  func.func @_ln_kernel(%arg0: i32, %arg1: memref<32x32xf32, #tpu.memory_space<vmem>>, %arg2: memref<1x32xf32, #tpu.memory_space<vmem>>, %arg3: memref<1x32xf32, #tpu.memory_space<vmem>>, %arg4: memref<32x32xbf16, #tpu.memory_space<vmem>>) attributes {dimension_semantics = [#tpu.dimension_semantics<parallel>], iteration_bounds = array<i64: 1>, scalar_prefetch = 0 : i64, scratch_operands = 0 : i64, tpu.core_type = #tpu.core_type<tc>, window_params = [{transform_indices = @transform_0, window_bounds = array<i64: 32, 32>}, {pipeline_mode = #tpu.pipeline_mode<synchronous>, transform_indices = @transform_1, window_bounds = array<i64: 1, 32>}, {pipeline_mode = #tpu.pipeline_mode<synchronous>, transform_indices = @transform_2, window_bounds = array<i64: 1, 32>}, {transform_indices = @transform_3, window_bounds = array<i64: 32, 32>}]} {
    %c0 = arith.constant 0 : index
    %c0_0 = arith.constant 0 : index
    %0 = vector.load %arg1[%c0, %c0_0] : memref<32x32xf32, #tpu.memory_space<vmem>>, vector<32x32xf32>
    %cst = arith.constant dense<0.000000e+00> : vector<32xf32>
    %1 = vector.multi_reduction <add>, %0, %cst [1] : vector<32x32xf32> to vector<32xf32>
    %2 = vector.shape_cast %1 : vector<32xf32> to vector<32x1xf32>
    %cst_1 = arith.constant 3.200000e+01 : f32
    %3 = vector.broadcast %cst_1 : f32 to vector<32x1xf32>
    %4 = arith.divf %2, %3 : vector<32x1xf32>
    %5 = vector.broadcast %4 : vector<32x1xf32> to vector<32x32xf32>
    %6 = arith.subf %0, %5 : vector<32x32xf32>
    %7 = vector.broadcast %4 : vector<32x1xf32> to vector<32x32xf32>
    %8 = arith.subf %0, %7 : vector<32x32xf32>
    %9 = arith.mulf %6, %8 : vector<32x32xf32>
    %cst_2 = arith.constant dense<0.000000e+00> : vector<32xf32>
    %10 = vector.multi_reduction <add>, %9, %cst_2 [1] : vector<32x32xf32> to vector<32xf32>
    %11 = vector.shape_cast %10 : vector<32xf32> to vector<32x1xf32>
    %cst_3 = arith.constant 3.200000e+01 : f32
    %12 = vector.broadcast %cst_3 : f32 to vector<32x1xf32>
    %13 = arith.divf %11, %12 : vector<32x1xf32>
    %14 = vector.broadcast %4 : vector<32x1xf32> to vector<32x32xf32>
    %15 = arith.subf %0, %14 : vector<32x32xf32>
    %cst_4 = arith.constant 9.99999996E-13 : f32
    %16 = vector.broadcast %cst_4 : f32 to vector<32x1xf32>
    %17 = arith.addf %13, %16 : vector<32x1xf32>
    %18 = math.rsqrt %17 : vector<32x1xf32>
    %19 = vector.broadcast %18 : vector<32x1xf32> to vector<32x32xf32>
    %20 = arith.mulf %15, %19 : vector<32x32xf32>
    %c0_5 = arith.constant 0 : index
    %c0_6 = arith.constant 0 : index
    %21 = vector.load %arg2[%c0_5, %c0_6] : memref<1x32xf32, #tpu.memory_space<vmem>>, vector<1x32xf32>
    %22 = vector.broadcast %21 : vector<1x32xf32> to vector<32x32xf32>
    %23 = arith.mulf %20, %22 : vector<32x32xf32>
    %c0_7 = arith.constant 0 : index
    %c0_8 = arith.constant 0 : index
    %24 = vector.load %arg3[%c0_7, %c0_8] : memref<1x32xf32, #tpu.memory_space<vmem>>, vector<1x32xf32>
    %25 = vector.broadcast %24 : vector<1x32xf32> to vector<32x32xf32>
    %26 = arith.addf %23, %25 : vector<32x32xf32>
    %27 = arith.truncf %26 : vector<32x32xf32> to vector<32x32xbf16>
    %c0_9 = arith.constant 0 : index
    %c0_10 = arith.constant 0 : index
    %28 = vector.load %arg4[%c0_9, %c0_10] : memref<32x32xbf16, #tpu.memory_space<vmem>>, vector<32x32xbf16>
    tpu.vector_store %arg4[%c0_9, %c0_10], %27 {strides = array<i32>} : memref<32x32xbf16, #tpu.memory_space<vmem>>, vector<32x32xbf16>,
    return
  }
  func.func @transform_0(%arg0: i32) -> (i32, i32) {
    %c0_i32 = arith.constant 0 : i32
    %c0_i32_0 = arith.constant 0 : i32
    return %arg0, %c0_i32 : i32, i32
  }
  func.func @transform_1(%arg0: i32) -> (i32, i32) {
    %c0_i32 = arith.constant 0 : i32
    %c0_i32_0 = arith.constant 0 : i32
    %c0_i32_1 = arith.constant 0 : i32
    return %c0_i32, %c0_i32_0 : i32, i32
  }
  func.func @transform_2(%arg0: i32) -> (i32, i32) {
    %c0_i32 = arith.constant 0 : i32
    %c0_i32_0 = arith.constant 0 : i32
    %c0_i32_1 = arith.constant 0 : i32
    return %c0_i32, %c0_i32_0 : i32, i32
  }
  func.func @transform_3(%arg0: i32) -> (i32, i32) {
    %c0_i32 = arith.constant 0 : i32
    %c0_i32_0 = arith.constant 0 : i32
    return %arg0, %c0_i32 : i32, i32
  }
}

</mosaic_0001>

<bundles_post_ra>
// kernel: tpu_custom_call.1
= control target key start
LH: loop header
LB: loop body
LE: loop exit
PB: predicated region body
PF: predicated region fallthrough
CT: control target
= control target key end

     0   :  { %8 = vsyncpa [#allocation3], 0  ;;  %s287_s0 = inlined_call_operand.hbm [shape: f32[32,32], index: 0, kind: input, shape index: {}]   ;;  %s288_s1 = inlined_call_operand.vmem [shape: f32[1,32], index: 1, kind: input, shape index: {}]   ;;  %s289_s2 = inlined_call_operand.vmem [shape: f32[1,32], index: 2, kind: input, shape index: {}]   ;;  %s290_s3 = inlined_call_operand.hbm [shape: bf16[32,32], index: 3, kind: output, shape index: {}]  }
   0x1   :  { %9 = vsyncpa [#allocation4], 0  ;;  %s219_s12 = smov [#allocation2]   ;;  %s171_s16 = scalar_lea.hbm %s287_s0, 512 }
   0x2   :  { %s15_s13 = sshll.u32 %s219_s12, 4  ;;  %p172_p0 = scmp.ne.s32.totalorder %s287_s0, %s171_s16  ;;  %s16_s13 = int_to_ptr.vmem [resolvable:$true] %s15_s13 }
   0x3   :  { %p175_p1 = scmp.lt.u32.totalorder %s171_s16, %s287_s0 }
   0x5   :  { %p177_p2 = pnand %p175_p1, %p172_p0 }
   0x7   :  { %180 = shalt.err (!%p177_p2)
}
   0x8   :  { %s181_s21 = scalar_lea.vmem %s16_s13, 512  ;;  %p186_p4 = scmp.lt.s32.totalorder %s16_s13, %s16_s13 }
   0x9   :  { %p182_p3 = scmp.ne.s32.totalorder %s16_s13, %s181_s21  ;;  %p187_p5 = scmp.lt.s32.totalorder %s181_s21, %s181_s21 }
   0xb   :  { %p188_p6 = por %p187_p5, %p186_p4 }
   0xd   :  { %p189_p7 = pnand %p188_p6, %p182_p3 }
   0xf   :  { %192 = shalt.err (!%p189_p7)
}
  0x10   :  { %s220_s22 = smov 128   ;;  %s221_s23 = smov 8  }
  0x11   :  { %21 = dma.hbm_to_vmem [thread:$0]  %s287_s0, 512, %s16_s13, [#allocation3], %s220_s22, %s220_s22, %s221_s23  }
  0x12   :  { %215 = dma.done.wait [#allocation3], 512  }
  0x13   :  { %216 = vsyncadd [#allocation3], 4294966784  ;;  %vm33_vm0 = vcmask 261120   ;;  %v29_v0 = vld [vmem:[#allocation2] sm:$0xff]  ;;  %v31_v1 = vld [vmem:[#allocation2 + $0x10] sm:$0xff]  ;;  %vm125_vm1 = vcmask 257024  }
  0x14   :  { %v30_v2 = vld [vmem:[#allocation2 + $0x8] sm:$0xff]  ;;  %v34_v3 = vsel %vm33_vm0, %v29_v0, 0.0  ;;  %v40_v4 = vsel %vm33_vm0, %v31_v1, 0.0  ;;  %v32_v5 = vld [vmem:[#allocation2 + $0x18] sm:$0xff]  ;;  %v147_v41 = vld [vmem:[%s288_s1] ss:$0 sm:$0xff] }
  0x15   :  { %35 = vadd.xlane.f32.xlu0 %v34_v3  ;;  %41 = vadd.xlane.f32.xlu1 %v40_v4  ;;  %v37_v6 = vsel %vm33_vm0, %v30_v2, 0.0  ;;  %v43_v7 = vsel %vm33_vm0, %v32_v5, 0.0  ;;  %v148_v43 = vld [vmem:[%s289_s2] ss:$0 sm:$0xff]  ;;  %s222_s1 = smov [#allocation5]  }
  0x16   :  { %s135_s2 = sshll.u32 %s222_s1, 4  ;;  %s136_s2 = int_to_ptr.vmem [resolvable:$true] %s135_s2 }
  0x17   :  { %s193_s29 = scalar_lea.vmem %s136_s2, 256  ;;  %p198_p9 = scmp.lt.s32.totalorder %s136_s2, %s136_s2 }
  0x18   :  { %p194_p8 = scmp.ne.s32.totalorder %s136_s2, %s193_s29  ;;  %p199_p10 = scmp.lt.s32.totalorder %s193_s29, %s193_s29 }
  0x19   :  { %38 = vadd.xlane.f32.xlu0 %v37_v6  ;;  %44 = vadd.xlane.f32.xlu1 %v43_v7 }
  0x1a   :  { %p200_p11 = por %p199_p10, %p198_p9 }
  0x1c   :  { %p201_p12 = pnand %p200_p11, %p194_p8 }
  0xa2   :  { %v36_v8 = vpop.xlane.xlu0 %35  ;;  %v42_v9 = vpop.xlane.xlu1 %41 }
  0xa3   :  { %v47_v10 = vmul.f32 0.03125, %v36_v8  ;;  %v49_v11 = vmul.f32 0.03125, %v42_v9 }
  0xa5   :  { %v51_v12 = vsub.f32 %v29_v0, %v47_v10  ;;  %v53_v13 = vsub.f32 %v31_v1, %v49_v11 }
  0xa6   :  { %v39_v14 = vpop.xlane.xlu0 %38  ;;  %v45_v15 = vpop.xlane.xlu1 %44 }
  0xa7   :  { %v48_v16 = vmul.f32 0.03125, %v39_v14  ;;  %v50_v17 = vmul.f32 0.03125, %v45_v15  ;;  %v55_v18 = vmul.f32 %v51_v12, %v51_v12  ;;  %v57_v19 = vmul.f32 %v53_v13, %v53_v13 }
  0xa9   :  { %v52_v20 = vsub.f32 %v30_v2, %v48_v16  ;;  %v54_v21 = vsub.f32 %v32_v5, %v50_v17  ;;  %v59_v22 = vsel %vm33_vm0, %v55_v18, 0.0  ;;  %v65_v23 = vsel %vm33_vm0, %v57_v19, 0.0 }
  0xaa   :  { %60 = vadd.xlane.f32.xlu0 %v59_v22 }
  0xab   :  { %v56_v24 = vmul.f32 %v52_v20, %v52_v20  ;;  %v58_v25 = vmul.f32 %v54_v21, %v54_v21 }
  0xad   :  { %v62_v26 = vsel %vm33_vm0, %v56_v24, 0.0  ;;  %v68_v27 = vsel %vm33_vm0, %v58_v25, 0.0 }
  0xae   :  { %66 = vadd.xlane.f32.xlu0 %v65_v23  ;;  %63 = vadd.xlane.f32.xlu1 %v62_v26 }
  0xb2   :  { %69 = vadd.xlane.f32.xlu1 %v68_v27 }
 0x137   :  { %v61_v28 = vpop.xlane.xlu0 %60 }
 0x138   :  { %v71_v29 = vmul.f32 0.03125, %v61_v28 }
 0x13a   :  { %v75_v30 = vadd.f32 1e-12, %v71_v29 }
 0x13b   :  { %v64_v31 = vpop.xlane.xlu1 %63  ;;  %v67_v32 = vpop.xlane.xlu0 %66 }
 0x13c   :  { %163 = vrsqrt.f32 %v75_v30  ;;  %v72_v33 = vmul.f32 0.03125, %v64_v31  ;;  %v73_v34 = vmul.f32 0.03125, %v67_v32 }
 0x13e   :  { %v76_v35 = vadd.f32 1e-12, %v72_v33  ;;  %v77_v36 = vadd.f32 1e-12, %v73_v34 }
 0x13f   :  { %v70_v37 = vpop.xlane.xlu1 %69 }
 0x140   :  { %165 = vrsqrt.f32 %v76_v35  ;;  %v74_v38 = vmul.f32 0.03125, %v70_v37 }
 0x141   :  { %167 = vrsqrt.f32 %v77_v36 }
 0x142   :  { %v78_v39 = vadd.f32 1e-12, %v74_v38 }
 0x144   :  { %169 = vrsqrt.f32 %v78_v39 }
 0x146   :  { %v164_v40 = vpop.eup %163 }
 0x147   :  { %v83_v42 = vmul.f32 %v164_v40, %v51_v12 }
 0x149   :  { %v94_v44 = vmul.f32 %v147_v41, %v83_v42 }
 0x14a   :  { %v166_v45 = vpop.eup %165 }
 0x14b   :  { %v168_v46 = vpop.eup %167  ;;  %v105_v47 = vadd.f32 %v148_v43, %v94_v44  ;;  %v84_v48 = vmul.f32 %v166_v45, %v52_v20 }
 0x14c   :  { %v85_v49 = vmul.f32 %v168_v46, %v53_v13 }
 0x14d   :  { %v153_v50 = vpack.c.bf16 %v105_v47, %v105_v47  ;;  %v95_v51 = vmul.f32 %v147_v41, %v84_v48 }
 0x14e   :  { %v170_v52 = vpop.eup %169  ;;  %v96_v53 = vmul.f32 %v147_v41, %v85_v49 }
 0x14f   :  { %v106_v54 = vadd.f32 %v148_v43, %v95_v51  ;;  %v86_v55 = vmul.f32 %v170_v52, %v54_v21  ;;  %126 = vst.msk [vmem:[#allocation5] sm:$0xf] %vm125_vm1, %v153_v50 }
 0x150   :  { %v107_v56 = vadd.f32 %v148_v43, %v96_v53 }
 0x151   :  { %v154_v57 = vpack.c.bf16 %v106_v54, %v106_v54  ;;  %v97_v58 = vmul.f32 %v147_v41, %v86_v55 }
 0x152   :  { %v155_v59 = vpack.c.bf16 %v107_v56, %v107_v56 }
 0x153   :  { %v108_v60 = vadd.f32 %v148_v43, %v97_v58  ;;  %127 = vst.msk [vmem:[#allocation5 + $0x4] sm:$0xf] %vm125_vm1, %v154_v57 }
 0x154   :  { %128 = vst.msk [vmem:[#allocation5 + $0x8] sm:$0xf] %vm125_vm1, %v155_v59 }
 0x155   :  { %v156_v61 = vpack.c.bf16 %v108_v60, %v108_v60 }
 0x157   :  { %129 = vst.msk [vmem:[#allocation5 + $0xc] sm:$0xf] %vm125_vm1, %v156_v61 }
 0x158   :  { %204 = shalt.err (!%p201_p12)
}
 0x159   :  { %s205_s5 = scalar_lea.hbm %s290_s3, 256 }
 0x15a   :  { %p206_p13 = scmp.ne.s32.totalorder %s290_s3, %s205_s5  ;;  %p209_p0 = scmp.lt.u32.totalorder %s205_s5, %s290_s3 }
 0x15c   :  { %p211_p1 = pnand %p209_p0, %p206_p13 }
 0x15e   :  { %214 = shalt.err (!%p211_p1)
}
 0x15f   :  { %s223_s10 = smov 64   ;;  %s224_s11 = smov 4  }
 0x160   :  { %141 = dma.vmem_to_hbm [thread:$0]  %s136_s2, 256, %s290_s3, [#allocation4], %s223_s10, %s223_s10, %s224_s11  }
 0x161   :  { %217 = dma.done.wait [#allocation4], 256  }
 0x162   :  { %218 = vsyncadd [#allocation4], 4294967040 }
 0x163   :  { %145 = vsyncpa [#allocation3], 1 }
 0x164   :  { %146 = vsyncpa [#allocation4], 1 }

</bundles_post_ra>
